<compile_context>
chip_gen: v6e
topology: v6e:2x2x1
jax: 0.10.0
libtpu: 0.0.40
codegen_flags: <defaults>
</compile_context>

<pallas_src>
import functools

import jax
import jax.numpy as jnp
from jax.experimental import pallas as pl
from jax.experimental.pallas import tpu as pltpu


def _mse_loss_kernel(x_ref, w_ref, b_ref, gt_ref, out_ref, acc_ref, *, true_b):
    # x: (TB, F)   w: (C, F)   b: (C, 1)   gt: (1, TB) int32
    # out: (1, 1, 1) f32 partial sum per partition (resident across inner axis)
    # acc: (1, TB) f32 VMEM scratch -- lane-dense running sum of per-row norms.
    i = pl.program_id(1)
    nb = pl.num_programs(1)

    @pl.when(i == 0)
    def _init():
        acc_ref[...] = jnp.zeros_like(acc_ref)

    x = x_ref[...]                                   # (TB, F)
    w = w_ref[...]                                   # (C, F)
    if x.dtype != w.dtype:
        # bf16 HBM stream already paid off; promote in VMEM, compute in f32.
        cdt = jnp.promote_types(x.dtype, w.dtype)
        x = x.astype(cdt)
        w = w.astype(cdt)
    b = b_ref[...].astype(jnp.float32)               # (C, 1)
    tb = x.shape[0]
    c = w.shape[0]

    # logits^T = W @ X^T  -> (C, TB): batch on the lane axis (lane-dense).
    logits_t = jax.lax.dot_general(
        w, x,
        dimension_numbers=(((1,), (1,)), ((), ())),
        preferred_element_type=jnp.float32) + b      # (C, TB)

    # One-hot (transposed): ohe[cls, j] = (gt[j] == cls).
    gt = gt_ref[...]                                 # (1, TB)
    class_ids = jax.lax.broadcasted_iota(jnp.int32, (c, tb), 0)
    ohe = jnp.where(class_ids == gt, 1.0, 0.0)       # (C, TB) f32

    diff = logits_t - ohe
    # Per-sample L2 norm: reduce over the small class (sublane) axis.
    norms = jnp.sqrt(jnp.sum(diff * diff, axis=0, keepdims=True))  # (1, TB)

    # Mask rows that are batch padding (partial / fully padded tiles).
    tile_idx = pl.program_id(0) * nb + i
    row_ids = tile_idx * tb + jax.lax.broadcasted_iota(jnp.int32, (1, tb), 1)
    norms = jnp.where(row_ids < true_b, norms, 0.0)

    # Lane-dense VPU accumulate every step; the cross-lane XLU reduce and the
    # sub-128-lane (1,1,1) store happen only once per partition.
    acc_ref[...] += norms

    @pl.when(i == nb - 1)
    def _finalize():
        out_ref[...] = jnp.sum(
            acc_ref[...], axis=1, keepdims=True).reshape(1, 1, 1)


def _round_up(v, m):
    return (v + m - 1) // m * m


def mse_loss(x, weight, bias, ground_truth, *, tb=None, num_cores=None):
    """x: (B, F); weight: (C, F) (PyTorch nn.Linear layout); bias: (C,);
    ground_truth: (B,) int. Returns scalar f32 loss."""
    B, F = x.shape
    C = weight.shape[0]
    assert C == 10, "module hard-codes one-hot width 10, so num_classes must be 10"

    # --- generation detection (best effort; always safe to fall back) -------
    kind = ""
    try:
        kind = jax.devices()[0].device_kind.lower()
    except Exception:
        pass
    if num_cores is None:
        # Only v7x-class chips expose 2 TensorCores worth splitting over.
        num_cores = 2 if "7" in kind else 1
    is_small_vmem = ("v5" in kind) and ("v5p" not in kind)   # v5e: 16 MiB scoped

    itemsize = jnp.dtype(x.dtype).itemsize
    if tb is None:
        # ~4 MiB X tile per buffer on v5e, ~8 MiB elsewhere (per review).
        target_bytes = (4 if is_small_vmem else 8) * 1024 * 1024
        cand = (target_bytes // max(1, F * itemsize)) // 128 * 128
        cand = max(128, min(8192, cand))
        tb = min(cand, _round_up(B, 128))
    tb = max(128, (tb // 128) * 128)          # multiple of 128 (lanes for gt)

    nb_total = (B + tb - 1) // tb
    num_par = num_cores if nb_total >= num_cores else 1

    w_itemsize = jnp.dtype(weight.dtype).itemsize

    def _build_and_run(num_par):
        nb = (nb_total + num_par - 1) // num_par   # tiles per partition
        b_pad = num_par * nb * tb

        if b_pad != B:
            xp = jnp.pad(x, ((0, b_pad - B), (0, 0)))
            gt_flat = jnp.pad(ground_truth.astype(jnp.int32), (0, b_pad - B))
        else:
            xp = x
            gt_flat = ground_truth.astype(jnp.int32)
        gt2 = gt_flat.reshape(1, b_pad)
        b2 = bias.reshape(C, 1)

        # Explicit VMEM budget: 2x double-buffered X tile + resident W/bias +
        # (C, TB)-shaped intermediates + scratch + margin.  Guards large F
        # (a single 128-row tile can exceed the MiB target); clamp to a range
        # that is safe on every generation (>= default scoped, < v7x physical).
        x_tile_b = tb * F * itemsize
        w_b = C * F * w_itemsize
        inter_b = 8 * C * tb * 4 + 8 * tb * 4
        est = 2 * x_tile_b + 2 * w_b + inter_b + (4 << 20)
        vmem_limit = int(min(max(est, 32 << 20), 56 << 20))

        if num_par > 1 and hasattr(pltpu, "CORE_PARALLEL") \
                and hasattr(pltpu, "ARBITRARY"):
            # Genuinely shard the leading axis across the 2 TensorCores (v7x).
            dims = (pltpu.CORE_PARALLEL, pltpu.ARBITRARY)
        else:
            dims = ("arbitrary", "arbitrary")

        kernel = functools.partial(_mse_loss_kernel, true_b=B)

        partial_sums = pl.pallas_call(
            kernel,
            out_shape=jax.ShapeDtypeStruct((num_par, 1, 1), jnp.float32),
            grid=(num_par, nb),
            in_specs=[
                # X: tiled over the batch dim -> pipelined / double-buffered.
                pl.BlockSpec((tb, F), lambda p, i, NB=nb: (p * NB + i, 0)),
                # W and bias: constant block index -> fetched once, resident.
                pl.BlockSpec((C, F), lambda p, i: (0, 0)),
                pl.BlockSpec((C, 1), lambda p, i: (0, 0)),
                # Labels: tiled like X, batch on the lane axis.
                pl.BlockSpec((1, tb), lambda p, i, NB=nb: (0, p * NB + i)),
            ],
            # Per-partition accumulator output: same block across the inner
            # (reduction) axis, distinct block per partition.
            out_specs=pl.BlockSpec((1, 1, 1), lambda p, i: (p, 0, 0)),
            scratch_shapes=[pltpu.VMEM((1, tb), jnp.float32)],
            compiler_params=pltpu.CompilerParams(
                dimension_semantics=dims,
                vmem_limit_bytes=vmem_limit),
        )(xp, weight, b2, gt2)

        return jnp.sum(partial_sums) / B

    try:
        return _build_and_run(num_par)
    except Exception:
        # Core-parallel lowering not available on this chip / jax version:
        # fall back to the single-partition build (identical semantics).
        if num_par > 1:
            return _build_and_run(1)
        raise


def _reference_loss(x, weight, bias, ground_truth):
    logits = x @ weight.T + bias
    ohe = jax.nn.one_hot(ground_truth, 10, dtype=jnp.float32)
    return jnp.mean(jnp.sqrt(jnp.sum((logits - ohe) ** 2, axis=1)))


if __name__ == "__main__":
    key = jax.random.PRNGKey(0)
    B, F, C = 8, 32, 10  # num_classes must be 10 (hard-coded one-hot width)

    kx, kw, kb, kg = jax.random.split(key, 4)
    x = jax.random.normal(kx, (B, F), dtype=jnp.float32)
    bound = 1.0 / (F ** 0.5)
    weight = jax.random.uniform(kw, (C, F), minval=-bound, maxval=bound,
                                dtype=jnp.float32)
    bias = jax.random.uniform(kb, (C,), minval=-bound, maxval=bound,
                              dtype=jnp.float32)
    ground_truth = jax.random.randint(kg, (B,), 0, C, dtype=jnp.int32)

    loss = mse_loss(x, weight, bias, ground_truth)
    jax.block_until_ready(loss)
    loss_ref = _reference_loss(x, weight, bias, ground_truth)
    assert jnp.allclose(loss, loss_ref, rtol=2e-4, atol=1e-5), (loss, loss_ref)

    # Second case: multiple batch tiles, padded-row masking (B not a multiple
    # of the tile size), and the partition split on 2-TC chips.
    B2, F2 = 300, 64
    k1, k2, k3, k4 = jax.random.split(jax.random.PRNGKey(1), 4)
    x2 = jax.random.normal(k1, (B2, F2), dtype=jnp.float32)
    bound2 = 1.0 / (F2 ** 0.5)
    w2 = jax.random.uniform(k2, (C, F2), minval=-bound2, maxval=bound2,
                            dtype=jnp.float32)
    bs2 = jax.random.uniform(k3, (C,), minval=-bound2, maxval=bound2,
                             dtype=jnp.float32)
    g2 = jax.random.randint(k4, (B2,), 0, C, dtype=jnp.int32)

    loss2 = mse_loss(x2, w2, bs2, g2, tb=128)
    jax.block_until_ready(loss2)
    loss2_ref = _reference_loss(x2, w2, bs2, g2)
    assert jnp.allclose(loss2, loss2_ref, rtol=2e-4, atol=1e-5), (loss2, loss2_ref)

    # Third case: bf16 X stream (halves the dominant HBM traffic); the kernel
    # promotes in VMEM and accumulates in f32, so results track the f32 ref.
    x2_bf16 = x2.astype(jnp.bfloat16)
    loss3 = mse_loss(x2_bf16, w2, bs2, g2, tb=128)
    jax.block_until_ready(loss3)
    loss3_ref = _reference_loss(x2_bf16.astype(jnp.float32), w2, bs2, g2)
    assert jnp.allclose(loss3, loss3_ref, rtol=2e-3, atol=1e-4), (loss3, loss3_ref)

    print("KERNEL_OK")
</pallas_src>

<mosaic_0001>
module attributes {stable_mosaic.version = 11 : i64} {
  func.func @_mse_loss_kernel(%arg0: i32, %arg1: i32, %arg2: memref<128x32xf32, #tpu.memory_space<vmem>>, %arg3: memref<10x32xf32, #tpu.memory_space<vmem>>, %arg4: memref<10x1xf32, #tpu.memory_space<vmem>>, %arg5: memref<1x128xi32, #tpu.memory_space<vmem>>, %arg6: memref<1x1x1xf32, #tpu.memory_space<vmem>>, %arg7: memref<1x128xf32, #tpu.memory_space<vmem>>) attributes {dimension_semantics = [#tpu.dimension_semantics<arbitrary>, #tpu.dimension_semantics<arbitrary>], iteration_bounds = array<i64: 1, 1>, scalar_prefetch = 0 : i64, scratch_operands = 1 : i64, tpu.core_type = #tpu.core_type<tc>, window_params = [{transform_indices = @transform_0, window_bounds = array<i64: 128, 32>}, {pipeline_mode = #tpu.pipeline_mode<synchronous>, transform_indices = @transform_1, window_bounds = array<i64: 10, 32>}, {pipeline_mode = #tpu.pipeline_mode<synchronous>, transform_indices = @transform_2, window_bounds = array<i64: 10, 1>}, {transform_indices = @transform_3, window_bounds = array<i64: 1, 128>}, {transform_indices = @transform_4, window_bounds = array<i64: 1, 1, 1>}]} {
    %c0_i32 = arith.constant 0 : i32
    %0 = arith.cmpi eq, %arg1, %c0_i32 : i32
    %1 = arith.extui %0 : i1 to i32
    %c0_i32_0 = arith.constant 0 : i32
    %2 = arith.cmpi ne, %1, %c0_i32_0 : i32
    scf.if %2 {
      %cst_18 = arith.constant 0.000000e+00 : f32
      %37 = vector.broadcast %cst_18 : f32 to vector<1x128xf32>
      %c0_19 = arith.constant 0 : index
      %c0_20 = arith.constant 0 : index
      %38 = vector.load %arg7[%c0_19, %c0_20] : memref<1x128xf32, #tpu.memory_space<vmem>>, vector<1x128xf32>
      tpu.vector_store %arg7[%c0_19, %c0_20], %37 {strides = array<i32>} : memref<1x128xf32, #tpu.memory_space<vmem>>, vector<1x128xf32>,
    } else {
    }
    %c0 = arith.constant 0 : index
    %c0_1 = arith.constant 0 : index
    %3 = vector.load %arg2[%c0, %c0_1] : memref<128x32xf32, #tpu.memory_space<vmem>>, vector<128x32xf32>
    %c0_2 = arith.constant 0 : index
    %c0_3 = arith.constant 0 : index
    %4 = vector.load %arg3[%c0_2, %c0_3] : memref<10x32xf32, #tpu.memory_space<vmem>>, vector<10x32xf32>
    %c0_4 = arith.constant 0 : index
    %c0_5 = arith.constant 0 : index
    %5 = vector.load %arg4[%c0_4, %c0_5] : memref<10x1xf32, #tpu.memory_space<vmem>>, vector<10x1xf32>
    %cst = arith.constant dense<0.000000e+00> : vector<10x128xf32>
    %6 = tpu.matmul %4, %3, %cst {dimension_numbers = #tpu.dot_dimension_numbers<[1], [1], [0], [0], [0, 0, 1, 0], [], []>} : vector<10x32xf32>, vector<128x32xf32>, vector<10x128xf32> -> vector<10x128xf32>
    %7 = vector.broadcast %5 : vector<10x1xf32> to vector<10x128xf32>
    %8 = arith.addf %6, %7 : vector<10x128xf32>
    %c0_6 = arith.constant 0 : index
    %c0_7 = arith.constant 0 : index
    %9 = vector.load %arg5[%c0_6, %c0_7] : memref<1x128xi32, #tpu.memory_space<vmem>>, vector<1x128xi32>
    %10 = tpu.iota {dimensions = array<i32: 0>} : vector<10x128xi32>
    %11 = vector.broadcast %9 : vector<1x128xi32> to vector<10x128xi32>
    %12 = arith.cmpi eq, %10, %11 : vector<10x128xi32>
    %cst_8 = arith.constant 1.000000e+00 : f32
    %cst_9 = arith.constant 0.000000e+00 : f32
    %13 = vector.broadcast %cst_8 : f32 to vector<10x128xf32>
    %14 = vector.broadcast %cst_9 : f32 to vector<10x128xf32>
    %15 = arith.select %12, %13, %14 : vector<10x128xi1>, vector<10x128xf32>
    %16 = arith.subf %8, %15 : vector<10x128xf32>
    %17 = arith.mulf %16, %16 : vector<10x128xf32>
    %cst_10 = arith.constant dense<0.000000e+00> : vector<128xf32>
    %18 = vector.multi_reduction <add>, %17, %cst_10 [0] : vector<10x128xf32> to vector<128xf32>
    %19 = vector.shape_cast %18 : vector<128xf32> to vector<1x128xf32>
    %20 = math.sqrt %19 : vector<1x128xf32>
    %c1_i32 = arith.constant 1 : i32
    %21 = arith.muli %arg0, %c1_i32 : i32
    %22 = arith.addi %21, %arg1 : i32
    %c128_i32 = arith.constant 128 : i32
    %23 = arith.muli %22, %c128_i32 : i32
    %24 = tpu.iota {dimensions = array<i32: 1>} : vector<1x128xi32>
    %25 = vector.broadcast %23 : i32 to vector<1x128xi32>
    %26 = arith.addi %25, %24 : vector<1x128xi32>
    %c8_i32 = arith.constant 8 : i32
    %27 = vector.broadcast %c8_i32 : i32 to vector<1x128xi32>
    %28 = arith.cmpi slt, %26, %27 : vector<1x128xi32>
    %cst_11 = arith.constant 0.000000e+00 : f32
    %29 = vector.broadcast %cst_11 : f32 to vector<1x128xf32>
    %30 = arith.select %28, %20, %29 : vector<1x128xi1>, vector<1x128xf32>
    %c0_12 = arith.constant 0 : index
    %c0_13 = arith.constant 0 : index
    %31 = vector.load %arg7[%c0_12, %c0_13] : memref<1x128xf32, #tpu.memory_space<vmem>>, vector<1x128xf32>
    %32 = arith.addf %31, %30 : vector<1x128xf32>
    %c0_14 = arith.constant 0 : index
    %c0_15 = arith.constant 0 : index
    %33 = vector.load %arg7[%c0_14, %c0_15] : memref<1x128xf32, #tpu.memory_space<vmem>>, vector<1x128xf32>
    tpu.vector_store %arg7[%c0_14, %c0_15], %32 {strides = array<i32>} : memref<1x128xf32, #tpu.memory_space<vmem>>, vector<1x128xf32>,
    %c0_i32_16 = arith.constant 0 : i32
    %34 = arith.cmpi eq, %arg1, %c0_i32_16 : i32
    %35 = arith.extui %34 : i1 to i32
    %c0_i32_17 = arith.constant 0 : i32
    %36 = arith.cmpi ne, %35, %c0_i32_17 : i32
    scf.if %36 {
      %c0_18 = arith.constant 0 : index
      %c0_19 = arith.constant 0 : index
      %37 = vector.load %arg7[%c0_18, %c0_19] : memref<1x128xf32, #tpu.memory_space<vmem>>, vector<1x128xf32>
      %cst_20 = arith.constant dense<0.000000e+00> : vector<1xf32>
      %38 = vector.multi_reduction <add>, %37, %cst_20 [1] : vector<1x128xf32> to vector<1xf32>
      %39 = vector.shape_cast %38 : vector<1xf32> to vector<1x1xf32>
      %40 = vector.shape_cast %39 : vector<1x1xf32> to vector<1x1x1xf32>
      %c0_21 = arith.constant 0 : index
      %c0_22 = arith.constant 0 : index
      %c0_23 = arith.constant 0 : index
      %41 = vector.load %arg6[%c0_21, %c0_22, %c0_23] : memref<1x1x1xf32, #tpu.memory_space<vmem>>, vector<1x1x1xf32>
      tpu.vector_store %arg6[%c0_21, %c0_22, %c0_23], %40 {strides = array<i32>} : memref<1x1x1xf32, #tpu.memory_space<vmem>>, vector<1x1x1xf32>,
    } else {
    }
    return
  }
  func.func @transform_0(%arg0: i32, %arg1: i32) -> (i32, i32) {
    %c1_i32 = arith.constant 1 : i32
    %0 = arith.muli %arg0, %c1_i32 : i32
    %1 = arith.addi %0, %arg1 : i32
    %c0_i32 = arith.constant 0 : i32
    %c0_i32_0 = arith.constant 0 : i32
    return %1, %c0_i32 : i32, i32
  }
  func.func @transform_1(%arg0: i32, %arg1: i32) -> (i32, i32) {
    %c0_i32 = arith.constant 0 : i32
    %c0_i32_0 = arith.constant 0 : i32
    %c0_i32_1 = arith.constant 0 : i32
    return %c0_i32, %c0_i32_0 : i32, i32
  }
  func.func @transform_2(%arg0: i32, %arg1: i32) -> (i32, i32) {
    %c0_i32 = arith.constant 0 : i32
    %c0_i32_0 = arith.constant 0 : i32
    %c0_i32_1 = arith.constant 0 : i32
    return %c0_i32, %c0_i32_0 : i32, i32
  }
  func.func @transform_3(%arg0: i32, %arg1: i32) -> (i32, i32) {
    %c1_i32 = arith.constant 1 : i32
    %0 = arith.muli %arg0, %c1_i32 : i32
    %1 = arith.addi %0, %arg1 : i32
    %c0_i32 = arith.constant 0 : i32
    %c0_i32_0 = arith.constant 0 : i32
    return %c0_i32, %1 : i32, i32
  }
  func.func @transform_4(%arg0: i32, %arg1: i32) -> (i32, i32, i32) {
    %c0_i32 = arith.constant 0 : i32
    %c0_i32_0 = arith.constant 0 : i32
    %c0_i32_1 = arith.constant 0 : i32
    return %arg0, %c0_i32, %c0_i32_0 : i32, i32, i32
  }
}

</mosaic_0001>

<bundles_post_ra>
// kernel: tpu_custom_call.1
= control target key start
LH: loop header
LB: loop body
LE: loop exit
PB: predicated region body
PF: predicated region fallthrough
CT: control target
= control target key end

     0   :  { %vm89_vm0 = vcmask 261120   ;;  %v395_v2 = vmov 0   ;;  %s523_s0 = inlined_call_operand.vmem [shape: f32[128,32], index: 0, kind: input, shape index: {}]   ;;  %s524_s1 = inlined_call_operand.vmem [shape: f32[10,32], index: 1, kind: input, shape index: {}]   ;;  %s525_s2 = inlined_call_operand.vmem [shape: f32[10,1], index: 2, kind: input, shape index: {}]   ;;  %s526_s3 = inlined_call_operand.vmem [shape: s32[1,128], index: 3, kind: input, shape index: {}]   ;;  %s527_s4 = inlined_call_operand.hbm [shape: f32[1,1,1], index: 4, kind: output, shape index: {}]  }
   0x1   :  { %v74_v0 = vld [vmem:[%s523_s0 + $0x78] sm:$0xff]  ;;  %v73_v1 = vld [vmem:[%s523_s0 + $0x70] sm:$0xff]  ;;  %370 = vset.pattern.permute.xlu0 %v395_v2  ;;  %v72_v3 = vld [vmem:[%s523_s0 + $0x68] sm:$0xff] }
   0x2   :  { %332 = vmatprep.subr.msk.mxu0 %vm89_vm0, %v74_v0  ;;  %v75_v4 = vld [vmem:[%s524_s1] sm:$0xff]  ;;  %v78_v5 = vld [vmem:[%s525_s2 + $0x8] sm:$0x3] }
   0x3   :  { %333 = vmatpush3.xpose.msk.msra.mxu0 %vm89_vm0, %v74_v0  ;;  %364 = vmatprep.mubr.msk.f32.mxu0 %vm89_vm0, %v75_v4 }
   0x4   :  { %334 = vmatprep.subr.msk.mxu0 %vm89_vm0, %v73_v1 }
   0x7   :  { %335 = vmatpush3.xpose.msk.msra.mxu0 %vm89_vm0, %v73_v1 }
   0x8   :  { %9 = vsyncpa [#allocation4], 0  ;;  %336 = vmatprep.subr.msk.mxu0 %vm89_vm0, %v72_v3  ;;  %86 = vperm.xlu0 %370, %v78_v5   ;;  %v396_v6 = vmov 0.0   ;;  %v71_v7 = vld [vmem:[%s523_s0 + $0x60] sm:$0xff]  ;;  %v70_v9 = vld [vmem:[%s523_s0 + $0x58] sm:$0xff]  ;;  %v220_v22 = vlaneseq  ;;  %vm235_vm3 = vcmask 1041408  }
   0x9   :  { %58 = vst [vmem:[#allocation2] sm:$0x1] %v396_v6  ;;  %v77_v8 = vld [vmem:[%s525_s2] sm:$0xff]  ;;  %v69_v10 = vld [vmem:[%s523_s0 + $0x50] sm:$0xff]  ;;  %v68_v11 = vld [vmem:[%s523_s0 + $0x48] sm:$0xff]  ;;  %vm266_vm7 = vcmask 1040384  }
   0xa   :  { %v67_v12 = vld [vmem:[%s523_s0 + $0x40] sm:$0xff]  ;;  %v66_v13 = vld [vmem:[%s523_s0 + $0x38] sm:$0xff]  ;;  %v65_v14 = vld [vmem:[%s523_s0 + $0x30] sm:$0xff]  ;;  %v221_v23 = vshrl.u32 %v220_v22, 7  ;;  %v254_v46 = vand.u32 127, %v220_v22  ;;  %vm270_vm8 = vcmask 0  }
   0xb   :  { %337 = vmatpush3.xpose.msk.msra.mxu0 %vm89_vm0, %v72_v3  ;;  %v64_v15 = vld [vmem:[%s523_s0 + $0x28] sm:$0xff]  ;;  %v63_v16 = vld [vmem:[%s523_s0 + $0x20] sm:$0xff]  ;;  %v62_v17 = vld [vmem:[%s523_s0 + $0x18] sm:$0xff] }
   0xc   :  { %338 = vmatprep.subr.msk.mxu0 %vm89_vm0, %v71_v7  ;;  %81 = vperm.xlu0 %370, %v77_v8   ;;  %v61_v18 = vld [vmem:[%s523_s0 + $0x10] sm:$0xff]  ;;  %v60_v19 = vld [vmem:[%s523_s0 + $0x8] sm:$0xff]  ;;  %v59_v20 = vld [vmem:[%s523_s0] sm:$0xff]  ;;  %v222_v24 = vadd.s32 8, %v221_v23  ;;  %vm257_vm4 = vcmp.lt.s32.totalorder %v254_v46, 8  ;;  %s397_s0 = smov [#allocation3]  }
   0xd   :  { %v76_v21 = vld [vmem:[%s524_s1 + $0x8] sm:$0x3]  ;;  %v313_v25 = vld [vmem:[%s526_s3] ss:$0 sm:$0xff]  ;;  %s278_s1 = sshll.u32 %s397_s0, 4  ;;  %s279_s1 = int_to_ptr.vmem [resolvable:$true] %s278_s1 }
   0xe   :  { %vm228_vm1 = vcmp.eq.s32.totalorder %v222_v24, %v313_v25  ;;  %vm227_vm2 = vcmp.eq.s32.totalorder %v221_v23, %v313_v25  ;;  %s373_s3 = scalar_lea.vmem %s279_s1, 16  ;;  %s377_s30 = scalar_lea.vmem %s279_s1, 32 }
   0xf   :  { %339 = vmatpush3.xpose.msk.msra.mxu0 %vm89_vm0, %v71_v7  ;;  %v230_v28 = vsel %vm228_vm1, 1.0, %v396_v6  ;;  %v229_v32 = vsel %vm227_vm2, 1.0, %v396_v6  ;;  %p374_p0 = scmp.ne.s32.totalorder %s279_s1, %s373_s3  ;;  %p378_p1 = scmp.lt.s32.totalorder %s279_s1, %s279_s1 }
  0x10   :  { %340 = vmatprep.subr.msk.mxu0 %vm89_vm0, %v70_v9  ;;  %v259_v51 = vld [vmem:[#allocation2] sm:$0x1]  ;;  %p379_p2 = scmp.lt.s32.totalorder %s377_s30, %s373_s3 }
  0x12   :  { %p380_p3 = por %p379_p2, %p378_p1 }
  0x13   :  { %341 = vmatpush3.xpose.msk.msra.mxu0 %vm89_vm0, %v70_v9 }
  0x14   :  { %342 = vmatprep.subr.msk.mxu0 %vm89_vm0, %v69_v10  ;;  %p381_p4 = pnand %p380_p3, %p374_p0 }
  0x17   :  { %343 = vmatpush3.xpose.msk.msra.mxu0 %vm89_vm0, %v69_v10 }
  0x18   :  { %344 = vmatprep.subr.msk.mxu0 %vm89_vm0, %v68_v11 }
  0x1b   :  { %345 = vmatpush3.xpose.msk.msra.mxu0 %vm89_vm0, %v68_v11 }
  0x1c   :  { %346 = vmatprep.subr.msk.mxu0 %vm89_vm0, %v67_v12 }
  0x1f   :  { %347 = vmatpush3.xpose.msk.msra.mxu0 %vm89_vm0, %v67_v12 }
  0x20   :  { %348 = vmatprep.subr.msk.mxu0 %vm89_vm0, %v66_v13 }
  0x23   :  { %349 = vmatpush3.xpose.msk.msra.mxu0 %vm89_vm0, %v66_v13 }
  0x24   :  { %350 = vmatprep.subr.msk.mxu0 %vm89_vm0, %v65_v14 }
  0x27   :  { %351 = vmatpush3.xpose.msk.msra.mxu0 %vm89_vm0, %v65_v14 }
  0x28   :  { %352 = vmatprep.subr.msk.mxu0 %vm89_vm0, %v64_v15 }
  0x2b   :  { %353 = vmatpush3.xpose.msk.msra.mxu0 %vm89_vm0, %v64_v15 }
  0x2c   :  { %354 = vmatprep.subr.msk.mxu0 %vm89_vm0, %v63_v16 }
  0x2f   :  { %355 = vmatpush3.xpose.msk.msra.mxu0 %vm89_vm0, %v63_v16 }
  0x30   :  { %356 = vmatprep.subr.msk.mxu0 %vm89_vm0, %v62_v17 }
  0x33   :  { %357 = vmatpush3.xpose.msk.msra.mxu0 %vm89_vm0, %v62_v17 }
  0x34   :  { %358 = vmatprep.subr.msk.mxu0 %vm89_vm0, %v61_v18 }
  0x37   :  { %359 = vmatpush3.xpose.msk.msra.mxu0 %vm89_vm0, %v61_v18 }
  0x38   :  { %360 = vmatprep.subr.msk.mxu0 %vm89_vm0, %v60_v19 }
  0x3b   :  { %361 = vmatpush3.xpose.msk.msra.mxu0 %vm89_vm0, %v60_v19 }
  0x3c   :  { %362 = vmatprep.subr.msk.mxu0 %vm89_vm0, %v59_v20 }
  0x3f   :  { %363 = vmatpush3.xpose.msk.msra.mxu0 %vm89_vm0, %v59_v20 }
  0x42   :  { %365 = vmatmul.mubr.msk.f32.vlgmr.msra.gmra.mxu0 %vm89_vm0, %v76_v21 }
  0x83   :  { %v87_v26 = vpop.permute.xlu0 %86 }
  0x87   :  { %v82_v30 = vpop.permute.xlu0 %81 }
 0x102   :  { %v366_v27 = vpop.f32.mrf.mxu0 }
 0x103   :  { %v216_v29 = vadd.f32 %v366_v27, %v87_v26 }
 0x104   :  { %v210_v31 = vpop.f32.mrf.mxu0 }
 0x105   :  { %v232_v33 = vsub.f32 %v216_v29, %v230_v28  ;;  %v211_v34 = vadd.f32 %v210_v31, %v82_v30 }
 0x107   :  { %v234_v35 = vmul.f32 %v232_v33, %v232_v33  ;;  %v231_v36 = vsub.f32 %v211_v34, %v229_v32 }
 0x109   :  { %v236_v37 = vsel %vm235_vm3, %v234_v35, 0.0  ;;  %v233_v38 = vmul.f32 %v231_v36, %v231_v36 }
 0x10b   :  { %v237_v39 = vadd.f32 %v236_v37, %v233_v38 }
 0x10d   :  { %v238_v40 = vrot.slane %v237_v39, 4 }
 0x10f   :  { %v239_v41 = vadd.f32 %v238_v40, %v237_v39 }
 0x111   :  { %v240_v42 = vrot.slane %v239_v41, 2 }
 0x113   :  { %v241_v43 = vadd.f32 %v240_v42, %v239_v41 }
 0x115   :  { %v242_v44 = vrot.slane %v241_v43, 1 }
 0x117   :  { %v243_v45 = vadd.f32 %v242_v44, %v241_v43 }
 0x119   :  { %371 = vrsqrt.f32 %v243_v45  ;;  %vm246_vm5 = vcmp.eq.f32.partialorder %v243_v45, inf  ;;  %v249_v49 = vand.u32 2147483648, %v243_v45  ;;  %vm248_vm6 = vcmp.eq.f32.partialorder %v243_v45, 0.0 }
 0x126   :  { %v372_v47 = vpop.eup %371 }
 0x127   :  { %v245_v48 = vmul.f32 %v372_v47, %v243_v45 }
 0x129   :  { %v247_v50 = vsel %vm246_vm5, %v243_v45, %v245_v48 }
 0x12a   :  { %v250_v52 = vsel %vm248_vm6, %v249_v49, %v247_v50 }
 0x12b   :  { %v258_v53 = vsel %vm257_vm4, %v250_v52, 0.0 }
 0x12c   :  { %v260_v54 = vadd.f32 %v259_v51, %v258_v53 }
 0x12e   :  { %261 = vst [vmem:[#allocation2] sm:$0x1] %v260_v54 }
 0x135   :  { %v265_v55 = vld [vmem:[#allocation2] sm:$0x1] }
 0x136   :  { %v267_v56 = vsel %vm266_vm7, %v265_v55, 0.0 }
 0x137   :  { %268 = vadd.xlane.f32.xlu1 %v267_v56 }
 0x1c0   :  { %v269_v57 = vpop.xlane.xlu1 %268 }
 0x1c1   :  { %271 = vst.msk [vmem:[#allocation3] sm:$0x1] %vm270_vm8, %v269_v57 }
 0x1c2   :  { %384 = shalt.err (!%p381_p4)
}
 0x1c3   :  { %281 = dma.vmem_to_hbm [thread:$0]  %s279_s1, 16, %s527_s4, [#allocation4]  }
 0x1c4   :  { %393 = dma.done.wait [#allocation4], 16  }
 0x1c5   :  { %394 = vsyncadd [#allocation4], 4294967280 }
 0x1c6   :  { %285 = vsyncpa [#allocation4], 1 }

</bundles_post_ra>
